<compile_context>
chip_gen: v6e
topology: v6e:2x2x1
jax: 0.10.0
libtpu: 0.0.40
codegen_flags: <defaults>
</compile_context>

<pallas_src>
import functools

import jax
import jax.numpy as jnp
from jax.experimental import pallas as pl
from jax.experimental.pallas import tpu as pltpu

_LANES = 128
# ~2 MiB per block: with input + output each double-buffered that is ~8 MiB of
# VMEM, inside the default scoped limit on v5e (16 MiB), v6e and v7x (32 MiB),
# while still amortizing the ~0.35 us per-grid-step overhead.
_TILE_BYTES = 2 * 1024 * 1024


# ------------------------------- kernel -------------------------------------


def _neg_scale_kernel(scale, g_ref, o_ref):
    # backward: dx = (-lambda) * g ; `scale` is a static Python float closed
    # over via functools.partial (no SMEM operand, no host->device transfer).
    o_ref[...] = (g_ref[...] * scale).astype(o_ref.dtype)


# ------------------------------ wrapper --------------------------------------


def _sublane_align(dtype):
    """Sublane packing granularity: 8 for 32-bit, 16 for 16-bit, 32 for 8-bit."""
    itemsize = jnp.dtype(dtype).itemsize
    return max(8, 32 // max(itemsize, 1))


def _neg_scale_pallas(g, lambda_):
    """Compute -lambda_ * g elementwise with a single Pallas pass."""
    orig_shape, dtype = g.shape, g.dtype
    itemsize = jnp.dtype(dtype).itemsize
    align = _sublane_align(dtype)
    blk_elems = align * _LANES

    flat = g.reshape(-1)
    n = flat.shape[0]
    padded = pl.cdiv(n, blk_elems) * blk_elems
    needs_pad = padded != n
    if needs_pad:
        flat = jnp.pad(flat, (0, padded - n))
    slab = flat.reshape(-1, _LANES)
    rows = slab.shape[0]  # multiple of `align` (>= 8) by construction

    # MiB-scale tile, multiple of the dtype's sublane alignment.
    tile = max(align, _TILE_BYTES // (_LANES * itemsize))
    tile = (tile // align) * align
    if rows <= tile:
        tile = rows  # single full-array block

    out_slab = pl.pallas_call(
        functools.partial(_neg_scale_kernel, -float(lambda_)),
        out_shape=jax.ShapeDtypeStruct(slab.shape, dtype),
        grid=(pl.cdiv(rows, tile),),  # last partial block is masked by Pallas
        in_specs=[pl.BlockSpec((tile, _LANES), lambda i: (i, 0))],
        out_specs=pl.BlockSpec((tile, _LANES), lambda i: (i, 0)),
        compiler_params=pltpu.CompilerParams(
            dimension_semantics=("parallel",)  # lets v7x shard across 2 TCs
        ),
    )(slab)

    out = out_slab.reshape(-1)
    if needs_pad:
        out = out[:n]
    return out.reshape(orig_shape)


# --------------------------- custom-vjp wiring --------------------------------


@functools.partial(jax.custom_vjp, nondiff_argnums=(1,))
def gradient_reversal(x, lambda_=1.0):
    # Forward pass is the identity; JAX arrays are immutable, so returning x
    # is equivalent to PyTorch's x.clone() and costs nothing.
    return x


def _grl_fwd(x, lambda_):
    return x, None  # no residuals needed (grad shape/dtype come from g)


def _grl_bwd(lambda_, _res, g):
    return (_neg_scale_pallas(g, lambda_),)


gradient_reversal.defvjp(_grl_fwd, _grl_bwd)


class GradientReversal:
    """JAX/Pallas equivalent of the PyTorch GradientReversal module."""

    def __init__(self, lambda_=1.0):
        self.lambda_ = float(lambda_)

    def update_lambda(self, p):
        self.lambda_ = float(p)

    def __call__(self, x):
        return gradient_reversal(x, self.lambda_)


# --------------------------------- main ---------------------------------------


if __name__ == "__main__":
    key = jax.random.PRNGKey(0)
    x = jax.random.normal(key, (2, 4, 16, 16), dtype=jnp.float32)  # NCHW

    grl = GradientReversal(lambda_=0.5)

    # Forward: identity.
    y = grl(x)
    jax.block_until_ready(y)
    assert y.shape == x.shape and y.dtype == x.dtype
    assert bool(jnp.allclose(y, x)), "forward must be identity"

    # Backward: gradients reversed and scaled by -lambda (Pallas kernel).
    loss_fn = lambda inp: jnp.sum(grl(inp) * 2.0)
    g = jax.grad(loss_fn)(x)
    jax.block_until_ready(g)
    expected = jnp.full_like(x, -0.5 * 2.0)
    assert bool(jnp.allclose(g, expected, atol=1e-6)), "backward must be -lambda*g"

    # Also exercise a shape whose size is NOT a multiple of 8*128 (masked tail).
    x2 = jax.random.normal(jax.random.PRNGKey(1), (3, 5, 7, 11), dtype=jnp.float32)
    g2 = jax.grad(lambda inp: jnp.sum(grl(inp)))(x2)
    jax.block_until_ready(g2)
    assert bool(jnp.allclose(g2, jnp.full_like(x2, -0.5), atol=1e-6))

    print("KERNEL_OK")
</pallas_src>

<mosaic_0001>
module attributes {stable_mosaic.version = 11 : i64} {
  func.func @_neg_scale_kernel(%arg0: i32, %arg1: memref<16x128xf32, #tpu.memory_space<vmem>>, %arg2: memref<16x128xf32, #tpu.memory_space<vmem>>) attributes {dimension_semantics = [#tpu.dimension_semantics<parallel>], iteration_bounds = array<i64: 1>, scalar_prefetch = 0 : i64, scratch_operands = 0 : i64, tpu.core_type = #tpu.core_type<tc>, window_params = [{transform_indices = @transform_0, window_bounds = array<i64: 16, 128>}, {transform_indices = @transform_1, window_bounds = array<i64: 16, 128>}]} {
    %c0 = arith.constant 0 : index
    %c0_0 = arith.constant 0 : index
    %0 = vector.load %arg1[%c0, %c0_0] : memref<16x128xf32, #tpu.memory_space<vmem>>, vector<16x128xf32>
    %cst = arith.constant -5.000000e-01 : f32
    %1 = vector.broadcast %cst : f32 to vector<16x128xf32>
    %2 = arith.mulf %0, %1 : vector<16x128xf32>
    %c0_1 = arith.constant 0 : index
    %c0_2 = arith.constant 0 : index
    %3 = vector.load %arg2[%c0_1, %c0_2] : memref<16x128xf32, #tpu.memory_space<vmem>>, vector<16x128xf32>
    tpu.vector_store %arg2[%c0_1, %c0_2], %2 {strides = array<i32>} : memref<16x128xf32, #tpu.memory_space<vmem>>, vector<16x128xf32>,
    return
  }
  func.func @transform_0(%arg0: i32) -> (i32, i32) {
    %c0_i32 = arith.constant 0 : i32
    %c0_i32_0 = arith.constant 0 : i32
    return %arg0, %c0_i32 : i32, i32
  }
  func.func @transform_1(%arg0: i32) -> (i32, i32) {
    %c0_i32 = arith.constant 0 : i32
    %c0_i32_0 = arith.constant 0 : i32
    return %arg0, %c0_i32 : i32, i32
  }
}

</mosaic_0001>

<bundles_post_ra>
// kernel: tpu_custom_call.1
= control target key start
LH: loop header
LB: loop body
LE: loop exit
PB: predicated region body
PF: predicated region fallthrough
CT: control target
= control target key end

     0   :  { %6 = vsyncpa [#allocation3], 0  ;;  %s114_s0 = inlined_call_operand.hbm [shape: f32[16,128], index: 0, kind: input, shape index: {}]   ;;  %s115_s1 = inlined_call_operand.hbm [shape: f32[16,128], index: 1, kind: output, shape index: {}]  }
   0x1   :  { %7 = vsyncpa [#allocation4], 0  ;;  %s94_s6 = smov [#allocation2]  }
   0x2   :  { %s13_s7 = sshll.u32 %s94_s6, 4  ;;  %s14_s7 = int_to_ptr.vmem [resolvable:$true] %s13_s7 }
   0x3   :  { %s58_s8 = scalar_lea.vmem %s14_s7, 256  ;;  %p63_p1 = scmp.lt.s32.totalorder %s14_s7, %s14_s7 }
   0x4   :  { %p59_p0 = scmp.ne.s32.totalorder %s14_s7, %s58_s8  ;;  %p64_p2 = scmp.lt.s32.totalorder %s58_s8, %s58_s8 }
   0x6   :  { %p65_p3 = por %p64_p2, %p63_p1 }
   0x8   :  { %p66_p4 = pnand %p65_p3, %p59_p0 }
   0xa   :  { %69 = shalt.err (!%p66_p4)
}
   0xb   :  { %s95_s9 = smov 128   ;;  %s96_s10 = smov 8  }
   0xc   :  { %19 = dma.hbm_to_vmem [thread:$0]  %s114_s0, 256, %s14_s7, [#allocation3], %s95_s9, %s95_s9, %s96_s10  }
   0xd   :  { %90 = dma.done.wait [#allocation3], 256  }
   0xe   :  { %91 = vsyncadd [#allocation3], 4294967040  ;;  %s97_s13 = smov [#allocation5]   ;;  %v23_v0 = vld [vmem:[#allocation2] sm:$0xff]  ;;  %v24_v1 = vld [vmem:[#allocation2 + $0x8] sm:$0xff] }
   0xf   :  { %s34_s14 = sshll.u32 %s97_s13, 4  ;;  %v25_v2 = vmul.f32 -0.5, %v23_v0  ;;  %v26_v3 = vmul.f32 -0.5, %v24_v1  ;;  %s35_s14 = int_to_ptr.vmem [resolvable:$true] %s34_s14 }
  0x10   :  { %s70_s15 = scalar_lea.vmem %s35_s14, 256  ;;  %p75_p6 = scmp.lt.s32.totalorder %s35_s14, %s35_s14 }
  0x11   :  { %27 = vst [vmem:[#allocation5] sm:$0xff] %v25_v2  ;;  %28 = vst [vmem:[#allocation5 + $0x8] sm:$0xff] %v26_v3  ;;  %p71_p5 = scmp.ne.s32.totalorder %s35_s14, %s70_s15  ;;  %p76_p7 = scmp.lt.s32.totalorder %s70_s15, %s70_s15 }
  0x13   :  { %p77_p8 = por %p76_p7, %p75_p6 }
  0x15   :  { %p78_p9 = pnand %p77_p8, %p71_p5 }
  0x17   :  { %81 = shalt.err (!%p78_p9)
}
  0x18   :  { %40 = dma.vmem_to_hbm [thread:$0]  %s35_s14, 256, %s115_s1, [#allocation4], %s95_s9, %s95_s9, %s96_s10  }
  0x19   :  { %92 = dma.done.wait [#allocation4], 256  }
  0x1a   :  { %93 = vsyncadd [#allocation4], 4294967040 }
  0x1b   :  { %44 = vsyncpa [#allocation3], 1 }
  0x1c   :  { %45 = vsyncpa [#allocation4], 1 }

</bundles_post_ra>
